<compile_context>
chip_gen: v5e
topology: v5e:2x2
jax: 0.10.0
libtpu: 0.0.40
codegen_flags: <defaults>
</compile_context>

<pallas_src>
import functools
import math

import jax
import jax.numpy as jnp
from jax.experimental import pallas as pl
from jax.experimental.pallas import tpu as pltpu

LANES = 512                 # lane-dense last dim (multiple of 128)
PARTS = 2                   # parallel partial-sum slices (2 TCs on v7x)
MAX_TILE_ROWS = 2048        # cap -> 4 MiB f32 input blocks
TEMP_HEADROOM_TILES = 6     # budget for full-tile f32 elementwise temporaries
VMEM_CAP_BYTES = 48 << 20   # stay well under v7x's 64 MiB physical VMEM
PAD_LOGIT = -1.0e4          # pad logit: bce==0, pt==1 -> focal==0 for any gamma>=0


def _focal_loss_kernel(x_ref, t_ref, o_ref, acc_ref, *, gamma):
    j = pl.program_id(1)

    @pl.when(j == 0)
    def _():
        acc_ref[...] = jnp.zeros_like(acc_ref)

    x = x_ref[...].astype(jnp.float32)
    t = t_ref[...].astype(jnp.float32)

    # Numerically stable binary_cross_entropy_with_logits (reduction='none'):
    #   bce = max(x, 0) - x * t + log1p(exp(-|x|))
    bce = jnp.maximum(x, 0.0) - x * t + jnp.log1p(jnp.exp(-jnp.abs(x)))

    pt = jnp.exp(-bce)
    one_minus_pt = jnp.maximum(1.0 - pt, 0.0)   # pt can round slightly above 1

    g = float(gamma)
    if g == int(g) and int(g) >= 0:
        # integer gamma: repeated multiply keeps pow (exp/log) off the EUP slot
        gi = int(g)
        if gi == 0:
            w = jnp.ones_like(one_minus_pt)
        else:
            w = one_minus_pt
            for _ in range(gi - 1):
                w = w * one_minus_pt
    else:
        w = one_minus_pt ** g

    focal = w * bce          # alpha applied once, outside the kernel

    # (8, LANES) f32 accumulator: per-step cross-vreg adds only (VALU);
    # the single cross-lane reduce happens once, on the last reduction step.
    rows = focal.shape[0]
    if rows == 8:
        acc_ref[...] += focal
    else:
        acc_ref[...] += focal.reshape(rows // 8, 8, LANES).sum(axis=0)

    @pl.when(j == pl.num_programs(1) - 1)
    def _():
        s = jnp.sum(acc_ref[...])
        o_ref[...] = jnp.broadcast_to(s, o_ref.shape)


def focal_loss(inputs, targets, alpha=1.0, gamma=2.0):
    """Pallas TPU focal loss. inputs/targets: logits/labels of identical shape.
    Returns scalar f32 mean focal loss."""
    assert inputs.shape == targets.shape
    total = int(math.prod(inputs.shape))

    x_flat = inputs.reshape(-1)
    t_flat = targets.reshape(-1)
    elem_bytes = x_flat.dtype.itemsize

    # --- tile sizing: largest tile whose (inputs x 2 buffers + temporaries + acc)
    #     budget fits under VMEM_CAP_BYTES; rows are a multiple of 8 ---
    acc_bytes = 8 * LANES * 4
    per_row_bytes = LANES * (2 * 2 * elem_bytes + TEMP_HEADROOM_TILES * 4)
    budget = VMEM_CAP_BYTES - acc_bytes - (2 << 20)
    tile_rows = max(8, min(MAX_TILE_ROWS, (budget // per_row_bytes) // 8 * 8))

    rows = pl.cdiv(total, LANES)
    rows_per_part = pl.cdiv(rows, PARTS)
    # Don't pick a tile bigger than each parallel slice needs.
    tile_rows = min(tile_rows, max(8, ((rows_per_part + 7) // 8) * 8))
    steps = pl.cdiv(rows_per_part, tile_rows)
    rows_pad = PARTS * steps * tile_rows

    pad = rows_pad * LANES - total
    if pad:
        # Pad logits with a large finite negative and targets with 0:
        # bce == 0 and pt == 1 exactly, so focal == 0 for every gamma >= 0.
        # (No per-element mask needed in the kernel.)
        x_flat = jnp.pad(x_flat, (0, pad), constant_values=PAD_LOGIT)
        t_flat = jnp.pad(t_flat, (0, pad), constant_values=0)
    x2 = x_flat.reshape(rows_pad, LANES)
    t2 = t_flat.reshape(rows_pad, LANES)

    # VMEM budget: 2 inputs x 2 pipeline buffers x block + f32 temporaries headroom
    # + small accumulator + margin.
    block_bytes = tile_rows * LANES * elem_bytes
    tile_f32_bytes = tile_rows * LANES * 4
    vmem_needed = (2 * 2 * block_bytes + TEMP_HEADROOM_TILES * tile_f32_bytes
                   + acc_bytes + (2 << 20))
    vmem_limit = int(min(max(vmem_needed, 32 << 20), VMEM_CAP_BYTES))

    kernel = functools.partial(_focal_loss_kernel, gamma=float(gamma))
    in_spec = pl.BlockSpec((tile_rows, LANES), lambda p, j: (p * steps + j, 0))

    partials = pl.pallas_call(
        kernel,
        out_shape=jax.ShapeDtypeStruct((PARTS, 8, 128), jnp.float32),
        grid_spec=pltpu.PrefetchScalarGridSpec(
            num_scalar_prefetch=0,
            grid=(PARTS, steps),
            in_specs=[in_spec, in_spec],
            out_specs=pl.BlockSpec((1, 8, 128), lambda p, j: (p, 0, 0)),
            scratch_shapes=[pltpu.VMEM((8, LANES), jnp.float32)],
        ),
        compiler_params=pltpu.CompilerParams(
            dimension_semantics=("parallel", "arbitrary"),
            vmem_limit_bytes=vmem_limit,
        ),
    )(x2, t2)

    per_part = partials[:, 0, 0]           # every lane of a part's block holds its sum
    return jnp.float32(alpha) * jnp.sum(per_part) / jnp.float32(total)


def _reference_focal_loss(inputs, targets, alpha=1.0, gamma=2.0):
    x = inputs.astype(jnp.float32)
    t = targets.astype(jnp.float32)
    bce = jnp.maximum(x, 0.0) - x * t + jnp.log1p(jnp.exp(-jnp.abs(x)))
    pt = jnp.exp(-bce)
    return jnp.mean(alpha * (1.0 - pt) ** gamma * bce)


if __name__ == "__main__":
    key = jax.random.PRNGKey(0)
    k1, k2 = jax.random.split(key)

    B, C, H, W = 2, 4, 16, 16
    logits = jax.random.normal(k1, (B, C, H, W), dtype=jnp.float32)
    targets = jax.random.bernoulli(k2, p=0.5, shape=(B, C, H, W)).astype(jnp.float32)

    loss = focal_loss(logits, targets, alpha=1.0, gamma=2.0)
    loss = jax.block_until_ready(loss)

    ref = _reference_focal_loss(logits, targets, alpha=1.0, gamma=2.0)
    assert jnp.allclose(loss, ref, rtol=1e-5, atol=1e-6), (loss, ref)

    print("KERNEL_OK")
</pallas_src>

<mosaic_0001>
module attributes {stable_mosaic.version = 11 : i64} {
  func.func @_focal_loss_kernel(%arg0: i32, %arg1: i32, %arg2: memref<8x512xf32, #tpu.memory_space<vmem>>, %arg3: memref<8x512xf32, #tpu.memory_space<vmem>>, %arg4: memref<1x8x128xf32, #tpu.memory_space<vmem>>, %arg5: memref<8x512xf32, #tpu.memory_space<vmem>>) attributes {dimension_semantics = [#tpu.dimension_semantics<parallel>, #tpu.dimension_semantics<arbitrary>], iteration_bounds = array<i64: 2, 1>, scalar_prefetch = 0 : i64, scratch_operands = 1 : i64, tpu.core_type = #tpu.core_type<tc>, window_params = [{transform_indices = @transform_0, window_bounds = array<i64: 8, 512>}, {transform_indices = @transform_1, window_bounds = array<i64: 8, 512>}, {transform_indices = @transform_2, window_bounds = array<i64: 1, 8, 128>}]} {
    %c0_i32 = arith.constant 0 : i32
    %0 = arith.cmpi eq, %arg1, %c0_i32 : i32
    %1 = arith.extui %0 : i1 to i32
    %c0_i32_0 = arith.constant 0 : i32
    %2 = arith.cmpi ne, %1, %c0_i32_0 : i32
    scf.if %2 {
      %cst_14 = arith.constant 0.000000e+00 : f32
      %30 = vector.broadcast %cst_14 : f32 to vector<8x512xf32>
      %c0_15 = arith.constant 0 : index
      %c0_16 = arith.constant 0 : index
      %31 = vector.load %arg5[%c0_15, %c0_16] : memref<8x512xf32, #tpu.memory_space<vmem>>, vector<8x512xf32>
      tpu.vector_store %arg5[%c0_15, %c0_16], %30 {strides = array<i32>} : memref<8x512xf32, #tpu.memory_space<vmem>>, vector<8x512xf32>,
    } else {
    }
    %c0 = arith.constant 0 : index
    %c0_1 = arith.constant 0 : index
    %3 = vector.load %arg2[%c0, %c0_1] : memref<8x512xf32, #tpu.memory_space<vmem>>, vector<8x512xf32>
    %c0_2 = arith.constant 0 : index
    %c0_3 = arith.constant 0 : index
    %4 = vector.load %arg3[%c0_2, %c0_3] : memref<8x512xf32, #tpu.memory_space<vmem>>, vector<8x512xf32>
    %cst = arith.constant 0.000000e+00 : f32
    %5 = vector.broadcast %cst : f32 to vector<8x512xf32>
    %6 = arith.maximumf %3, %5 : vector<8x512xf32>
    %7 = arith.mulf %3, %4 : vector<8x512xf32>
    %8 = arith.subf %6, %7 : vector<8x512xf32>
    %9 = math.absf %3 : vector<8x512xf32>
    %cst_4 = arith.constant 0.000000e+00 : f32
    %10 = vector.broadcast %cst_4 : f32 to vector<8x512xf32>
    %11 = arith.subf %10, %9 : vector<8x512xf32>
    %12 = math.exp %11 : vector<8x512xf32>
    %13 = math.log1p %12 : vector<8x512xf32>
    %14 = arith.addf %8, %13 : vector<8x512xf32>
    %cst_5 = arith.constant 0.000000e+00 : f32
    %15 = vector.broadcast %cst_5 : f32 to vector<8x512xf32>
    %16 = arith.subf %15, %14 : vector<8x512xf32>
    %17 = math.exp %16 : vector<8x512xf32>
    %cst_6 = arith.constant 1.000000e+00 : f32
    %18 = vector.broadcast %cst_6 : f32 to vector<8x512xf32>
    %19 = arith.subf %18, %17 : vector<8x512xf32>
    %cst_7 = arith.constant 0.000000e+00 : f32
    %20 = vector.broadcast %cst_7 : f32 to vector<8x512xf32>
    %21 = arith.maximumf %19, %20 : vector<8x512xf32>
    %22 = arith.mulf %21, %21 : vector<8x512xf32>
    %23 = arith.mulf %22, %14 : vector<8x512xf32>
    %c0_8 = arith.constant 0 : index
    %c0_9 = arith.constant 0 : index
    %24 = vector.load %arg5[%c0_8, %c0_9] : memref<8x512xf32, #tpu.memory_space<vmem>>, vector<8x512xf32>
    %25 = arith.addf %24, %23 : vector<8x512xf32>
    %c0_10 = arith.constant 0 : index
    %c0_11 = arith.constant 0 : index
    %26 = vector.load %arg5[%c0_10, %c0_11] : memref<8x512xf32, #tpu.memory_space<vmem>>, vector<8x512xf32>
    tpu.vector_store %arg5[%c0_10, %c0_11], %25 {strides = array<i32>} : memref<8x512xf32, #tpu.memory_space<vmem>>, vector<8x512xf32>,
    %c0_i32_12 = arith.constant 0 : i32
    %27 = arith.cmpi eq, %arg1, %c0_i32_12 : i32
    %28 = arith.extui %27 : i1 to i32
    %c0_i32_13 = arith.constant 0 : i32
    %29 = arith.cmpi ne, %28, %c0_i32_13 : i32
    scf.if %29 {
      %c0_14 = arith.constant 0 : index
      %c0_15 = arith.constant 0 : index
      %30 = vector.load %arg5[%c0_14, %c0_15] : memref<8x512xf32, #tpu.memory_space<vmem>>, vector<8x512xf32>
      %31 = vector.shape_cast %30 : vector<8x512xf32> to vector<1x8x512xf32>
      %cst_16 = arith.constant dense<0.000000e+00> : vector<1xf32>
      %32 = vector.multi_reduction <add>, %31, %cst_16 [1, 2] : vector<1x8x512xf32> to vector<1xf32>
      %33 = vector.shape_cast %32 : vector<1xf32> to vector<1x1x1xf32>
      %34 = vector.extract %33[0, 0, 0] : f32 from vector<1x1x1xf32>
      %35 = vector.broadcast %34 : f32 to vector<1x8x128xf32>
      %c0_17 = arith.constant 0 : index
      %c0_18 = arith.constant 0 : index
      %c0_19 = arith.constant 0 : index
      %36 = vector.load %arg4[%c0_17, %c0_18, %c0_19] : memref<1x8x128xf32, #tpu.memory_space<vmem>>, vector<1x8x128xf32>
      tpu.vector_store %arg4[%c0_17, %c0_18, %c0_19], %35 {strides = array<i32>} : memref<1x8x128xf32, #tpu.memory_space<vmem>>, vector<1x8x128xf32>,
    } else {
    }
    return
  }
  func.func @transform_0(%arg0: i32, %arg1: i32) -> (i32, i32) {
    %c1_i32 = arith.constant 1 : i32
    %0 = arith.muli %arg0, %c1_i32 : i32
    %1 = arith.addi %0, %arg1 : i32
    %c0_i32 = arith.constant 0 : i32
    %c0_i32_0 = arith.constant 0 : i32
    return %1, %c0_i32 : i32, i32
  }
  func.func @transform_1(%arg0: i32, %arg1: i32) -> (i32, i32) {
    %c1_i32 = arith.constant 1 : i32
    %0 = arith.muli %arg0, %c1_i32 : i32
    %1 = arith.addi %0, %arg1 : i32
    %c0_i32 = arith.constant 0 : i32
    %c0_i32_0 = arith.constant 0 : i32
    return %1, %c0_i32 : i32, i32
  }
  func.func @transform_2(%arg0: i32, %arg1: i32) -> (i32, i32, i32) {
    %c0_i32 = arith.constant 0 : i32
    %c0_i32_0 = arith.constant 0 : i32
    %c0_i32_1 = arith.constant 0 : i32
    return %arg0, %c0_i32, %c0_i32_0 : i32, i32, i32
  }
}

</mosaic_0001>

<bundles_post_ra>
// kernel: tpu_custom_call.1
= control target key start
LH: loop header
LB: loop body
LE: loop exit
PB: predicated region body
PF: predicated region fallthrough
CT: control target
= control target key end

     0   :  { %7 = vsyncpa [#allocation4], 0  ;;  %s919_s0 = inlined_call_operand.hbm [shape: f32[16,512], index: 0, kind: input, shape index: {}]   ;;  %s920_s1 = inlined_call_operand.hbm [shape: f32[16,512], index: 1, kind: input, shape index: {}]   ;;  %s921_s2 = inlined_call_operand.hbm [shape: f32[2,8,128], index: 2, kind: output, shape index: {}]  }
   0x1   :  { %9 = vsyncpa [#allocation4 + $0x1], 0 }
   0x2   :  { %10 = vsyncpa [#allocation7], 0 }
   0x3   :  { %12 = vsyncpa [#allocation7 + $0x1], 0 }
   0x4   :  { %13 = vsyncpa [#allocation5], 0 }
   0x5   :  { %15 = vsyncpa [#allocation5 + $0x1], 0  ;;  %s762_s9 = smov 0   ;;  %s764_s10 = smov 0  }
   0x6   :  { %s766_s11 = smov 0   ;;  %s768_s12 = smov 0  }
   0x7   :  { %s770_s13 = smov 0   ;;  %s772_s14 = smov 0  }
   0x8 LB: > { %s486_s15 = sadd.s32 4294967295, %s745_s14   ;;  %s487_s16 = sadd.s32 4294967294, %s745_s14   ;;  %s745_s14 = sphi %s772_s14, %s21_s14   ;;  %s741_s13 = sphi %s770_s13, %s934_s13   ;;  %s737_s12 = sphi %s768_s12, %s933_s12   ;;  %s733_s11 = sphi %s766_s11, %s932_s11   ;;  %s729_s10 = sphi %s764_s10, %s931_s10   ;;  %s725_s9 = sphi %s762_s9, %s930_s9  }
   0x9   : > { %s33_s17 = sadd.s32 1, %s741_s13  ;;  %s42_s18 = sadd.s32 1, %s733_s11 }
   0xa   : > { %p35_p0 = scmp.ge.s32.totalorder %s33_s17, 2  ;;  %p49_p1 = scmp.ne.s32.totalorder %s733_s11, %s729_s10 }
   0xb   : > { %p50_p2 = scmp.eq.s32.totalorder %s745_s14, 0  ;;  %p55_p3 = scmp.ne.s32.totalorder %s729_s10, %s725_s9 }
   0xc   : > { %s936_s17 = smov (%p35_p0, %s33_s17), 0  ;;  %p56_p5 = scmp.eq.s32.totalorder %s486_s15, 0 }
   0xd   : > { %p803_p4 = por %p50_p2, %p49_p1  ;;  %s39_s20 = ssub.s32 %s741_s13, %s936_s17 }
   0xe   : > { %p107_p6 = scmp.eq.s32.totalorder %s486_s15, 1  ;;  %p40_p7 = scmp.eq.s32.totalorder %s39_s20, 0 }
   0xf   : > { %p809_p8 = por %p56_p5, %p55_p3  ;;  %p113_p10 = scmp.eq.s32.totalorder %s487_s16, 1 }
  0x10   : > { %p813_p9 = por %p107_p6, %p49_p1  ;;  %p489_p12 = scmp.ge.s32.totalorder %s745_s14, 2 }
  0x11   : > { %s818_s23 = scalar_select %p40_p7, %s733_s11, %s42_s18  }
  0x12   : > { %p820_p11 = por %p113_p10, %p55_p3  ;;  %p525_p13 = scmp.lt.s32.totalorder %s745_s14, 2 }
  0x13   : > { %s133_s25 = sand.u32 1, %s733_s11   ;;  %s504_s27 = sshll.u32 %s741_s13, 5 }
  0x14   : > { %s490_s26 = sshll.u32 %s133_s25, 5  ;;  %s143_s30 = scalar_lea.hbm %s919_s0, %s504_s27 }
  0x15   : > { %s137_s3 = scalar_lea.vmem [#allocation3], %s490_s26  ;;  %s145_s5 = sshll.u32 %s143_s30, 4  ;;  %s146_s5 = int_to_ptr.hbm [resolvable:$true] %s145_s5 }
  0x16   : > { %s147_s4 = sshll.u32 %s137_s3, 4  ;;  %p515_p0 = pnand %p525_p13, %p803_p4  ;;  %s148_s4 = int_to_ptr.vmem [resolvable:$true] %s147_s4 }
  0x17   : > { %p496_p1 = scmp.ge.s32.totalorder %s745_s14, 1  ;;  %p173_p2 = scmp.lt.s32.totalorder %s745_s14, 3 }
  0x18   : > { %s134_s6 = scalar_lea.sflag [#allocation4], %s133_s25  ;;  %s164_s15 = scalar_lea.hbm %s920_s1, %s504_s27 }
  0x19   : > { %517 = dma.hbm_to_vmem [thread:$0]  (!%p515_p0), %s146_s5, 512, %s148_s4, %s134_s6  }
  0x1a   : > { %p174_p3 = pnand %p496_p1, %p173_p2  ;;  %s158_s16 = scalar_lea.vmem [#allocation6], %s490_s26 }
  0x1b   : > { %s168_s18 = sshll.u32 %s158_s16, 4  ;;  %s166_s20 = sshll.u32 %s164_s15, 4  ;;  %s169_s18 = int_to_ptr.vmem [resolvable:$true] %s168_s18  ;;  %s167_s20 = int_to_ptr.hbm [resolvable:$true] %s166_s20 }
  0x1c   : > { %s155_s28 = scalar_lea.sflag [#allocation7], %s133_s25  ;;  %177 = sbr.rel (%p174_p3) target bundleno = 272 (0x110), region = 28 }
  0x1d   : > { %520 = dma.hbm_to_vmem [thread:$0]  (!%p515_p0), %s167_s20, 512, %s169_s18, %s155_s28  }
  0x1e   : > { %s839_s19 = sand.u32 (!%p174_p3), 1, %s729_s10  }
  0x1f   : > { %s497_s29 = sshll.u32 (!%p174_p3), %s839_s19, 5  ;;  %s180_s30 = scalar_lea.sflag (!%p174_p3), [#allocation4], %s839_s19 }
  0x20   : > { %s183_s3 = scalar_lea.vmem (!%p174_p3), [#allocation3], %s497_s29 }
  0x21   : > { %712 = dma.done.wait (%p809_p8), %s180_s30, 512  }
  0x22   : > { %714 = vsyncadd (%p809_p8), %s180_s30, 4294966784  ;;  %s190_s26 = scalar_lea.sflag [#allocation7], %s839_s19  ;;  %s848_s25 = scalar_lea.vmem [#allocation6], %s497_s29 }
  0x23   : > { %716 = dma.done.wait (%p809_p8), %s190_s26, 512  }
  0x24   : > { %718 = vsyncadd (%p809_p8), %s190_s26, 4294966784  ;;  %v230_v0 = vld [vmem:[%s183_s3] sm:$0xff]  ;;  %v231_v1 = vld [vmem:[%s183_s3 + $0x8] sm:$0xff]  ;;  %s499_s21 = sshll.u32 %s839_s19, 3  ;;  %s501_s27 = sshll.u32 %s737_s12, 3 }
  0x25   : > { %v854_v2 = vld [vmem:[%s183_s3 + $0x10] sm:$0xff]  ;;  %v856_v3 = vld [vmem:[%s183_s3 + $0x18] sm:$0xff]  ;;  %v250_v4 = vand.u32 2147483647, %v230_v0  ;;  %v251_v5 = vand.u32 2147483647, %v231_v1  ;;  %s378_s6 = scalar_lea.hbm %s921_s2, %s501_s27 }
  0x26   : > { %v252_v6 = vand.u32 2147483647, %v854_v2  ;;  %v253_v7 = vand.u32 2147483647, %v856_v3  ;;  %v234_v18 = vld [vmem:[%s848_s25] sm:$0xff]  ;;  %v235_v25 = vld [vmem:[%s848_s25 + $0x8] sm:$0xff] }
  0x27   : > { %v254_v8 = vsub.f32 0.0, %v250_v4  ;;  %v255_v9 = vsub.f32 0.0, %v251_v5  ;;  %v238_v26 = vmax.f32 %v230_v0, 0.0  ;;  %v239_v27 = vmax.f32 %v231_v1, 0.0  ;;  %v236_v29 = vld [vmem:[%s848_s25 + $0x10] sm:$0xff]  ;;  %v237_v33 = vld [vmem:[%s848_s25 + $0x18] sm:$0xff] }
  0x28   : > { %v256_v10 = vsub.f32 0.0, %v252_v6  ;;  %v257_v11 = vsub.f32 0.0, %v253_v7  ;;  %v242_v30 = vmul.f32 %v234_v18, %v230_v0  ;;  %v243_v37 = vmul.f32 %v235_v25, %v231_v1  ;;  %s219_s7 = scalar_lea.vmem [#allocation8], %s499_s21  ;;  %s382_s15 = sshll.u32 %s378_s6, 4  ;;  %s383_s15 = int_to_ptr.hbm [resolvable:$true] %s382_s15 }
  0x29   : > { %v258_v12 = vmul.f32 1.442695, %v254_v8  ;;  %v260_v13 = vmul.f32 1.442695, %v255_v9  ;;  %v240_v41 = vmax.f32 %v854_v2, 0.0  ;;  %v244_v42 = vmul.f32 %v236_v29, %v854_v2  ;;  %s380_s8 = sshll.u32 %s219_s7, 4  ;;  %s381_s8 = int_to_ptr.vmem [resolvable:$true] %s380_s8 }
  0x2a   : > { %v262_v14 = vmul.f32 1.442695, %v256_v10  ;;  %v264_v15 = vmul.f32 1.442695, %v257_v11  ;;  %v241_v44 = vmax.f32 %v856_v3, 0.0  ;;  %v245_v45 = vmul.f32 %v237_v33, %v856_v3  ;;  %s368_s18 = scalar_lea.sflag [#allocation5], %s839_s19 }
  0x2b   : > { %575 = vpow2.f32 %v258_v12  ;;  %v246_v49 = vsub.f32 %v238_v26, %v242_v30  ;;  %v247_v54 = vsub.f32 %v239_v27, %v243_v37  ;;  %v248_v59 = vsub.f32 %v240_v41, %v244_v42  ;;  %s673_s20 = sshra.s32 %s383_s15, 4  ;;  %s679_s30 = scalar_lea.hbm %s921_s2, 16  ;;  %s674_s20 = int_to_ptr.hbm [resolvable:$true] %s673_s20 }
  0x2c   : > { %577 = vpow2.f32 %v260_v13  ;;  %v249_v1 = vsub.f32 %v241_v44, %v245_v45  ;;  %s675_s28 = scalar_lea.hbm %s674_s20, 8  ;;  %p680_p7 = scmp.lt.s32.totalorder %s674_s20, %s921_s2 }
  0x2d   : > { %579 = vpow2.f32 %v262_v14  ;;  %p676_p4 = scmp.ne.s32.totalorder %s674_s20, %s675_s28  ;;  %p681_p8 = scmp.lt.s32.totalorder %s679_s30, %s675_s28 }
  0x2e   : > { %581 = vpow2.f32 %v264_v15 }
  0x2f   : > { %p677_p5 = pnand %p676_p4, %p813_p9  ;;  %p682_p10 = por %p681_p8, %p680_p7 }
  0x31   : > { %v576_v16 = vpop.eup %575  ;;  %p678_p6 = pneg %p677_p5 }
  0x32   : > { %v578_v17 = vpop.eup %577  ;;  %v266_v19 = vadd.f32 1.0, %v576_v16  ;;  %v269_v20 = vmul.f32 -0.5, %v576_v16  ;;  %v272_v34 = vand.u32 2147483647, %v576_v16 }
  0x33   : > { %v580_v21 = vpop.eup %579  ;;  %v275_v22 = vadd.f32 1.0, %v578_v17  ;;  %v278_v23 = vmul.f32 -0.5, %v578_v17  ;;  %v281_v38 = vand.u32 2147483647, %v578_v17  ;;  %p683_p13 = pnand %p682_p10, %p678_p6 }
  0x34   : > { %v582_v24 = vpop.eup %581  ;;  %583 = vlog2.f32 %v266_v19  ;;  %v284_v28 = vadd.f32 1.0, %v580_v21  ;;  %v270_v31 = vadd.f32 1.0, %v269_v20  ;;  %v287_v32 = vmul.f32 -0.5, %v580_v21 }
  0x35   : > { %585 = vlog2.f32 %v275_v22  ;;  %v279_v35 = vadd.f32 1.0, %v278_v23  ;;  %v293_v36 = vadd.f32 1.0, %v582_v24  ;;  %v296_v40 = vmul.f32 -0.5, %v582_v24 }
  0x36   : > { %587 = vlog2.f32 %v284_v28  ;;  %v288_v39 = vadd.f32 1.0, %v287_v32  ;;  %v290_v43 = vand.u32 2147483647, %v580_v21  ;;  %v271_v46 = vmul.f32 %v576_v16, %v270_v31 }
  0x37   : > { %589 = vlog2.f32 %v293_v36  ;;  %v297_v47 = vadd.f32 1.0, %v296_v40  ;;  %vm868_vm0 = vcmp.lt.f32.partialorder %v272_v34, 0.0004427343  ;;  %v280_v51 = vmul.f32 %v578_v17, %v279_v35 }
  0x38   : > { %v299_v52 = vand.u32 2147483647, %v582_v24  ;;  %vm872_vm1 = vcmp.lt.f32.partialorder %v281_v38, 0.0004427343  ;;  %v289_v57 = vmul.f32 %v580_v21, %v288_v39  ;;  %vm291_vm2 = vcmp.lt.f32.partialorder %v290_v43, 0.0004427343 }
  0x39   : > { %v298_v63 = vmul.f32 %v582_v24, %v297_v47 }
  0x3a   : > { %v584_v48 = vpop.eup %583  ;;  %vm300_vm3 = vcmp.lt.f32.partialorder %v299_v52, 0.0004427343 }
  0x3b   : > { %v586_v53 = vpop.eup %585  ;;  %v268_v55 = vmul.f32 0.6931472, %v584_v48 }
  0x3c   : > { %v588_v58 = vpop.eup %587  ;;  %v277_v60 = vmul.f32 0.6931472, %v586_v53 }
  0x3d   : > { %v274_v61 = vsel %vm868_vm0, %v271_v46, %v268_v55  ;;  %v286_v62 = vmul.f32 0.6931472, %v588_v58  ;;  %v590_v0 = vpop.eup %589 }
  0x3e   : > { %v283_v2 = vsel %vm872_vm1, %v280_v51, %v277_v60  ;;  %v302_v3 = vadd.f32 %v274_v61, %v246_v49  ;;  %v295_v5 = vmul.f32 0.6931472, %v590_v0 }
  0x3f   : > { %v292_v4 = vsel %vm291_vm2, %v289_v57, %v286_v62  ;;  %v303_v6 = vadd.f32 %v283_v2, %v247_v54 }
  0x40   : > { %v304_v7 = vadd.f32 %v292_v4, %v248_v59  ;;  %v306_v8 = vsub.f32 0.0, %v302_v3  ;;  %v301_v9 = vsel %vm300_vm3, %v298_v63, %v295_v5 }
  0x41   : > { %v307_v10 = vsub.f32 0.0, %v303_v6  ;;  %v305_v11 = vadd.f32 %v301_v9, %v249_v1 }
  0x42   : > { %v308_v12 = vsub.f32 0.0, %v304_v7  ;;  %v310_v13 = vmul.f32 1.442695, %v306_v8 }
  0x43   : > { %v312_v14 = vmul.f32 1.442695, %v307_v10  ;;  %v309_v15 = vsub.f32 0.0, %v305_v11 }
  0x44   : > { %591 = vpow2.f32 %v310_v13  ;;  %v314_v16 = vmul.f32 1.442695, %v308_v12 }
  0x45   : > { %593 = vpow2.f32 %v312_v14  ;;  %v316_v17 = vmul.f32 1.442695, %v309_v15 }
  0x46   : > { %595 = vpow2.f32 %v314_v16 }
  0x47   : > { %597 = vpow2.f32 %v316_v17 }
  0x4a   : > { %v592_v18 = vpop.eup %591 }
  0x4b   : > { %v594_v19 = vpop.eup %593  ;;  %v318_v20 = vsub.f32 1.0, %v592_v18 }
  0x4c   : > { %v596_v21 = vpop.eup %595  ;;  %v319_v22 = vsub.f32 1.0, %v594_v19 }
  0x4d   : > { %v320_v23 = vsub.f32 1.0, %v596_v21  ;;  %v322_v24 = vmax.f32 %v318_v20, 0.0  ;;  %v598_v25 = vpop.eup %597 }
  0x4e   : > { %v323_v26 = vmax.f32 %v319_v22, 0.0  ;;  %v321_v27 = vsub.f32 1.0, %v598_v25 }
  0x4f   : > { %v324_v28 = vmax.f32 %v320_v23, 0.0  ;;  %v326_v29 = vmul.f32 %v322_v24, %v322_v24 }
  0x50   : > { %v327_v30 = vmul.f32 %v323_v26, %v323_v26  ;;  %v325_v31 = vmax.f32 %v321_v27, 0.0 }
  0x51   : > { %v328_v32 = vmul.f32 %v324_v28, %v324_v28  ;;  %v330_v33 = vmul.f32 %v326_v29, %v302_v3 }
  0x52   : > { %v331_v34 = vmul.f32 %v327_v30, %v303_v6  ;;  %v329_v35 = vmul.f32 %v325_v31, %v325_v31 }
  0x53   : > { %v332_v36 = vmul.f32 %v328_v32, %v304_v7 }
  0x54   : > { %v353_v37 = vadd.f32 %v331_v34, %v330_v33  ;;  %v333_v38 = vmul.f32 %v329_v35, %v305_v11 }
  0x56   : > { %v354_v39 = vadd.f32 %v353_v37, %v332_v36 }
  0x58   : > { %v355_v40 = vadd.f32 %v354_v39, %v333_v38 }
  0x5a   : > { %356 = vadd.xlane.f32.xlu0 %v355_v40 }
  0xcd   : > { %v357_v41 = vpop.xlane.xlu0 %356 }
  0xce   : > { %v358_v42 = vrot.slane %v357_v41, 4 }
  0xd0   : > { %v359_v43 = vadd.f32 %v358_v42, %v357_v41 }
  0xd2   : > { %v360_v44 = vrot.slane %v359_v43, 2 }
  0xd4   : > { %v361_v45 = vadd.f32 %v360_v44, %v359_v43 }
  0xd6   : > { %v362_v46 = vrot.slane %v361_v45, 1 }
  0xd8   : > { %v363_v47 = vadd.f32 %v362_v46, %v361_v45 }
  0xda   : > { %506 = vpush %v363_v47 }
 0x10b   : > { %s507_s16 = spop %506 }
 0x10c   : > { %v365_v48 = vstv %s507_s16 }
 0x10d   : > { %366 = vst [vmem:[%s219_s7] sm:$0xff] %v365_v48 }
 0x10e   : > { %686 = shalt.err (!%p683_p13)
}
 0x10f   : > { %512 = dma.vmem_to_hbm [thread:$0]  (%p813_p9), %s381_s8, 128, %s383_s15, %s368_s18  }
 0x110 PF: > { %s394_s19 = sand.u32 1, %s725_s9   ;;  %p522_p0 = pnand %p489_p12, %p820_p11 }
 0x111   : > { %s395_s25 = scalar_lea.sflag [#allocation5], %s394_s19 }
 0x112   : > { %p523_p1 = pneg %p522_p0 }
 0x114   : > { %720 = dma.done.wait (%p523_p1), %s395_s25, 128  }
 0x115   : > { %722 = vsyncadd (%p523_p1), %s395_s25, 4294967168  ;;  %s21_s14 = sadd.s32 1, %s745_s14   ;;  %s930_s9 = smov %s729_s10 }
 0x116   : > { %p18_p2 = scmp.ge.s32.totalorder %s21_s14, 4   ;;  %s931_s10 = smov %s733_s11 }
 0x117   : > { %s932_s11 = smov %s818_s23  ;;  %s933_s12 = smov %s741_s13 }
 0x118   : > { %s934_s13 = smov %s936_s17  ;;  %20 = sbr.rel (!%p18_p2) target bundleno = 8 (0x8), region = 94 }
 0x11d   :  { %401 = vsyncpa [#allocation4], 1 }
 0x11e   :  { %403 = vsyncpa [#allocation4 + $0x1], 1 }
 0x11f   :  { %404 = vsyncpa [#allocation7], 1 }
 0x120   :  { %406 = vsyncpa [#allocation7 + $0x1], 1 }
 0x121   :  { %407 = vsyncpa [#allocation5], 1 }
 0x122   :  { %409 = vsyncpa [#allocation5 + $0x1], 1 }

</bundles_post_ra>
